<compile_context>
chip_gen: v5e
topology: v5e:2x2
jax: 0.10.0
libtpu: 0.0.40
codegen_flags: <defaults>
</compile_context>

<pallas_src>
import functools

import jax
import jax.numpy as jnp
from jax import lax
from jax.experimental import pallas as pl
from jax.experimental.pallas import tpu as pltpu

_LANE = 128


# ----------------------------------------------------------------------------
# Fused kernel: normalization + all GCN layers + readout, all VMEM-resident.
# ----------------------------------------------------------------------------
def _gcn_forward_kernel(*refs, num_layers, normalize):
    adj_ref, x_ref = refs[0], refs[1]
    o_ref = refs[-1]
    wb_refs = refs[2:-1]  # [w0, b0, w1, b1, ..., w_ro, b_ro]

    a_bf = adj_ref[...]  # bf16 adjacency (exact for 0/1 entries)

    if normalize:
        # Row degrees of A_hat = A + I  (self loop guarantees deg >= 1).
        deg = jnp.sum(a_bf.astype(jnp.float32), axis=-1, keepdims=True) + 1.0
        s = lax.rsqrt(deg)   # (N, 1)  D^{-1/2}
        s2 = s * s           # (N, 1)  D^{-1}  -> the folded "+ I" (self-loop) term

        def a_norm_matmul(m):
            # D^{-1/2} (A + I) D^{-1/2} @ m  ==  s * (A @ (s*m)) + s^2 * m
            # (scalings folded into the N*F operand: no normalized-A copy, no +I add)
            am = jnp.dot(a_bf, (s * m).astype(jnp.bfloat16),
                         preferred_element_type=jnp.float32)
            return s * am + s2 * m
    else:
        def a_norm_matmul(m):
            return jnp.dot(a_bf, m.astype(jnp.bfloat16),
                           preferred_element_type=jnp.float32)

    # ---- GCN layers: ReLU(A_norm @ H @ W + b), f32 bias/ReLU, bf16 MXU feeds ----
    h = x_ref[...].astype(jnp.float32)
    for li in range(num_layers):
        w_bf = wb_refs[2 * li][...]        # bf16, lane-dense padded
        b = wb_refs[2 * li + 1][...]       # f32
        f_in, f_out = w_bf.shape
        if f_out < f_in:
            # Down-projection: X@W first so the N^2 contraction uses F_out.
            m = jnp.dot(h.astype(jnp.bfloat16), w_bf,
                        preferred_element_type=jnp.float32)
            pre = a_norm_matmul(m)
        else:
            # Up-projection / square: A_norm@X first so N^2 contraction uses F_in.
            z = a_norm_matmul(h)
            pre = jnp.dot(z.astype(jnp.bfloat16), w_bf,
                          preferred_element_type=jnp.float32)
        h = jnp.maximum(pre + b, 0.0)

    # ---- readout: H @ W_ro + b_ro (lane-dense padded output; unmasked vst) ----
    w_ro, b_ro = wb_refs[-2][...], wb_refs[-1][...]
    out = jnp.dot(h.astype(jnp.bfloat16), w_ro,
                  preferred_element_type=jnp.float32) + b_ro
    o_ref[...] = out.astype(o_ref.dtype)


# ----------------------------------------------------------------------------
# Pallas wrapper (single block: whole problem sits in VMEM for one invocation)
# ----------------------------------------------------------------------------
def _full_spec(shape):
    return pl.BlockSpec(shape, lambda i: (0,) * len(shape))


def _round_up(x, m):
    return ((x + m - 1) // m) * m


def _pad2d(a, rows, cols):
    return jnp.pad(a, ((0, rows - a.shape[0]), (0, cols - a.shape[1])))


def gcn_forward(params, x, adj, normalize=True):
    n, in_c = x.shape
    layers = params["layers"]
    w_ro, b_ro = params["readout"]
    out_c = w_ro.shape[1]

    # ---- host-side lane-dense padding + dtype prep ----
    in_p = _round_up(in_c, _LANE)
    out_p = _round_up(out_c, _LANE)
    x_p = _pad2d(x.astype(jnp.float32), n, in_p)
    adj_bf = adj.astype(jnp.bfloat16)   # exact for binary adjacency; halves DMA

    padded_layers = []
    for (w, b) in layers:
        f_in, f_out = w.shape
        f_in_p, f_out_p = _round_up(f_in, _LANE), _round_up(f_out, _LANE)
        padded_layers.append((
            _pad2d(w, f_in_p, f_out_p).astype(jnp.bfloat16),
            _pad2d(b.astype(jnp.float32), 1, f_out_p),
        ))
    hid_p = padded_layers[-1][0].shape[1]
    w_ro_p = _pad2d(w_ro, hid_p, out_p).astype(jnp.bfloat16)
    b_ro_p = _pad2d(b_ro.astype(jnp.float32), 1, out_p)

    inputs = [adj_bf, x_p]
    in_specs = [_full_spec((n, n)), _full_spec((n, in_p))]
    for (w, b) in padded_layers:
        inputs += [w, b]
        in_specs += [_full_spec(w.shape), _full_spec(b.shape)]
    inputs += [w_ro_p, b_ro_p]
    in_specs += [_full_spec(w_ro_p.shape), _full_spec(b_ro_p.shape)]

    # ---- cost estimate (advisory, helps XLA schedule neighboring pads/slice) ----
    flops = 0
    for (w, _) in padded_layers:
        f_in_p, f_out_p = w.shape
        flops += 2 * n * n * min(f_in_p, f_out_p)   # A_norm contraction
        flops += 2 * n * f_in_p * f_out_p           # feature transform
    flops += 2 * n * w_ro_p.shape[0] * w_ro_p.shape[1]
    in_bytes = sum(int(a.size) * a.dtype.itemsize for a in inputs)
    cost = pl.CostEstimate(flops=int(flops), transcendentals=int(n),
                           bytes_accessed=int(in_bytes + n * out_p * 4))

    # ---- VMEM budget: inputs (double-buffered) + output + a few H temporaries.
    # No extra N^2 temporaries exist: the adjacency is used in place (bf16) and
    # the degree scaling is folded into the N*F operands.
    max_f = max([in_p, out_p] + [w.shape[1] for (w, _) in padded_layers])
    est = 2 * in_bytes + 2 * n * out_p * 4 + 6 * n * max_f * 4
    try:
        phys = pltpu.get_tpu_info().vmem_capacity_bytes
    except Exception:
        phys = 64 << 20  # conservative fallback (v7x-sized)
    cap = min(phys - (4 << 20), 100 << 20)  # ~60 MiB on v7x, ~100 MiB on v5e/v6e
    vmem_limit = int(min(max(est, 16 << 20), cap))

    kernel = functools.partial(
        _gcn_forward_kernel, num_layers=len(padded_layers), normalize=normalize)

    out = pl.pallas_call(
        kernel,
        out_shape=jax.ShapeDtypeStruct((n, out_p), jnp.float32),
        grid=(1,),
        in_specs=in_specs,
        out_specs=_full_spec((n, out_p)),
        compiler_params=pltpu.CompilerParams(
            dimension_semantics=("arbitrary",),
            vmem_limit_bytes=vmem_limit,
        ),
        cost_estimate=cost,
    )(*inputs)
    return out[:, :out_c]


# ----------------------------------------------------------------------------
# GCN model (parameter setup in plain JAX; hot path in the fused Pallas kernel)
# ----------------------------------------------------------------------------
def init_gcn_params(key, in_channels, hidden_channels, out_channels, layer_num):
    """Deterministic parameter init mirroring the module's layer structure."""
    dims = [in_channels] + [hidden_channels] * layer_num  # layer_num GCN layers
    params = {"layers": [], "readout": None}
    for li in range(layer_num):
        key, kw, kb = jax.random.split(key, 3)
        fan_in, fan_out = dims[li], dims[li + 1]
        bound = 1.0 / jnp.sqrt(fan_in)
        w = jax.random.uniform(kw, (fan_in, fan_out), jnp.float32, -bound, bound)
        b = jax.random.uniform(kb, (1, fan_out), jnp.float32, -bound, bound)
        params["layers"].append((w, b))
    key, kw, kb = jax.random.split(key, 3)
    bound = 1.0 / jnp.sqrt(hidden_channels)
    w_ro = jax.random.uniform(kw, (hidden_channels, out_channels), jnp.float32, -bound, bound)
    b_ro = jax.random.uniform(kb, (1, out_channels), jnp.float32, -bound, bound)
    params["readout"] = (w_ro, b_ro)
    return params


if __name__ == "__main__":
    # Small, deterministic problem: 32 nodes, 8 input feats, 32 hidden, 4 classes.
    N, IN_C, HID_C, OUT_C, LAYER_NUM = 32, 8, 32, 4, 3

    key = jax.random.PRNGKey(0)
    kx, ka, kp = jax.random.split(key, 3)

    x = jax.random.normal(kx, (N, IN_C), jnp.float32)
    # Random symmetric binary adjacency (no self loops; normalization adds I).
    a_upper = (jax.random.uniform(ka, (N, N)) < 0.2).astype(jnp.float32)
    adj = jnp.triu(a_upper, k=1)
    adj = adj + adj.T

    params = init_gcn_params(kp, IN_C, HID_C, OUT_C, LAYER_NUM)

    out = gcn_forward(params, x, adj, normalize=True)
    jax.block_until_ready(out)
    assert out.shape == (N, OUT_C), out.shape
    print("KERNEL_OK")
</pallas_src>

<mosaic_0001>
module attributes {stable_mosaic.version = 11 : i64} {
  func.func @_gcn_forward_kernel(%arg0: i32, %arg1: memref<32x32xbf16, #tpu.memory_space<vmem>>, %arg2: memref<32x128xf32, #tpu.memory_space<vmem>>, %arg3: memref<128x128xbf16, #tpu.memory_space<vmem>>, %arg4: memref<1x128xf32, #tpu.memory_space<vmem>>, %arg5: memref<128x128xbf16, #tpu.memory_space<vmem>>, %arg6: memref<1x128xf32, #tpu.memory_space<vmem>>, %arg7: memref<128x128xbf16, #tpu.memory_space<vmem>>, %arg8: memref<1x128xf32, #tpu.memory_space<vmem>>, %arg9: memref<128x128xbf16, #tpu.memory_space<vmem>>, %arg10: memref<1x128xf32, #tpu.memory_space<vmem>>, %arg11: memref<32x128xf32, #tpu.memory_space<vmem>>) attributes {dimension_semantics = [#tpu.dimension_semantics<arbitrary>], iteration_bounds = array<i64: 1>, scalar_prefetch = 0 : i64, scratch_operands = 0 : i64, tpu.core_type = #tpu.core_type<tc>, window_params = [{pipeline_mode = #tpu.pipeline_mode<synchronous>, transform_indices = @transform_0, window_bounds = array<i64: 32, 32>}, {pipeline_mode = #tpu.pipeline_mode<synchronous>, transform_indices = @transform_1, window_bounds = array<i64: 32, 128>}, {pipeline_mode = #tpu.pipeline_mode<synchronous>, transform_indices = @transform_2, window_bounds = array<i64: 128, 128>}, {pipeline_mode = #tpu.pipeline_mode<synchronous>, transform_indices = @transform_3, window_bounds = array<i64: 1, 128>}, {pipeline_mode = #tpu.pipeline_mode<synchronous>, transform_indices = @transform_4, window_bounds = array<i64: 128, 128>}, {pipeline_mode = #tpu.pipeline_mode<synchronous>, transform_indices = @transform_5, window_bounds = array<i64: 1, 128>}, {pipeline_mode = #tpu.pipeline_mode<synchronous>, transform_indices = @transform_6, window_bounds = array<i64: 128, 128>}, {pipeline_mode = #tpu.pipeline_mode<synchronous>, transform_indices = @transform_7, window_bounds = array<i64: 1, 128>}, {pipeline_mode = #tpu.pipeline_mode<synchronous>, transform_indices = @transform_8, window_bounds = array<i64: 128, 128>}, {pipeline_mode = #tpu.pipeline_mode<synchronous>, transform_indices = @transform_9, window_bounds = array<i64: 1, 128>}, {pipeline_mode = #tpu.pipeline_mode<synchronous>, transform_indices = @transform_10, window_bounds = array<i64: 32, 128>}]} {
    %c0 = arith.constant 0 : index
    %c0_0 = arith.constant 0 : index
    %0 = vector.load %arg1[%c0, %c0_0] : memref<32x32xbf16, #tpu.memory_space<vmem>>, vector<32x32xbf16>
    %1 = arith.extf %0 : vector<32x32xbf16> to vector<32x32xf32>
    %cst = arith.constant dense<0.000000e+00> : vector<32xf32>
    %2 = vector.multi_reduction <add>, %1, %cst [1] : vector<32x32xf32> to vector<32xf32>
    %3 = vector.shape_cast %2 : vector<32xf32> to vector<32x1xf32>
    %cst_1 = arith.constant 1.000000e+00 : f32
    %4 = vector.broadcast %cst_1 : f32 to vector<32x1xf32>
    %5 = arith.addf %3, %4 : vector<32x1xf32>
    %6 = math.rsqrt %5 : vector<32x1xf32>
    %7 = arith.mulf %6, %6 : vector<32x1xf32>
    %c0_2 = arith.constant 0 : index
    %c0_3 = arith.constant 0 : index
    %8 = vector.load %arg2[%c0_2, %c0_3] : memref<32x128xf32, #tpu.memory_space<vmem>>, vector<32x128xf32>
    %c0_4 = arith.constant 0 : index
    %c0_5 = arith.constant 0 : index
    %9 = vector.load %arg3[%c0_4, %c0_5] : memref<128x128xbf16, #tpu.memory_space<vmem>>, vector<128x128xbf16>
    %c0_6 = arith.constant 0 : index
    %c0_7 = arith.constant 0 : index
    %10 = vector.load %arg4[%c0_6, %c0_7] : memref<1x128xf32, #tpu.memory_space<vmem>>, vector<1x128xf32>
    %11 = vector.broadcast %6 : vector<32x1xf32> to vector<32x128xf32>
    %12 = arith.mulf %11, %8 : vector<32x128xf32>
    %13 = arith.truncf %12 : vector<32x128xf32> to vector<32x128xbf16>
    %cst_8 = arith.constant dense<0.000000e+00> : vector<32x128xf32>
    %14 = tpu.matmul %0, %13, %cst_8 {dimension_numbers = #tpu.dot_dimension_numbers<[1], [0], [0], [1], [0, 0, 1, 1], [], []>} : vector<32x32xbf16>, vector<32x128xbf16>, vector<32x128xf32> -> vector<32x128xf32>
    %15 = vector.broadcast %6 : vector<32x1xf32> to vector<32x128xf32>
    %16 = arith.mulf %15, %14 : vector<32x128xf32>
    %17 = vector.broadcast %7 : vector<32x1xf32> to vector<32x128xf32>
    %18 = arith.mulf %17, %8 : vector<32x128xf32>
    %19 = arith.addf %16, %18 : vector<32x128xf32>
    %20 = arith.truncf %19 : vector<32x128xf32> to vector<32x128xbf16>
    %cst_9 = arith.constant dense<0.000000e+00> : vector<32x128xf32>
    %21 = tpu.matmul %20, %9, %cst_9 {dimension_numbers = #tpu.dot_dimension_numbers<[1], [0], [0], [1], [0, 0, 1, 1], [], []>} : vector<32x128xbf16>, vector<128x128xbf16>, vector<32x128xf32> -> vector<32x128xf32>
    %22 = vector.broadcast %10 : vector<1x128xf32> to vector<32x128xf32>
    %23 = arith.addf %21, %22 : vector<32x128xf32>
    %cst_10 = arith.constant 0.000000e+00 : f32
    %24 = vector.broadcast %cst_10 : f32 to vector<32x128xf32>
    %25 = arith.maximumf %23, %24 : vector<32x128xf32>
    %c0_11 = arith.constant 0 : index
    %c0_12 = arith.constant 0 : index
    %26 = vector.load %arg5[%c0_11, %c0_12] : memref<128x128xbf16, #tpu.memory_space<vmem>>, vector<128x128xbf16>
    %c0_13 = arith.constant 0 : index
    %c0_14 = arith.constant 0 : index
    %27 = vector.load %arg6[%c0_13, %c0_14] : memref<1x128xf32, #tpu.memory_space<vmem>>, vector<1x128xf32>
    %28 = vector.broadcast %6 : vector<32x1xf32> to vector<32x128xf32>
    %29 = arith.mulf %28, %25 : vector<32x128xf32>
    %30 = arith.truncf %29 : vector<32x128xf32> to vector<32x128xbf16>
    %cst_15 = arith.constant dense<0.000000e+00> : vector<32x128xf32>
    %31 = tpu.matmul %0, %30, %cst_15 {dimension_numbers = #tpu.dot_dimension_numbers<[1], [0], [0], [1], [0, 0, 1, 1], [], []>} : vector<32x32xbf16>, vector<32x128xbf16>, vector<32x128xf32> -> vector<32x128xf32>
    %32 = vector.broadcast %6 : vector<32x1xf32> to vector<32x128xf32>
    %33 = arith.mulf %32, %31 : vector<32x128xf32>
    %34 = vector.broadcast %7 : vector<32x1xf32> to vector<32x128xf32>
    %35 = arith.mulf %34, %25 : vector<32x128xf32>
    %36 = arith.addf %33, %35 : vector<32x128xf32>
    %37 = arith.truncf %36 : vector<32x128xf32> to vector<32x128xbf16>
    %cst_16 = arith.constant dense<0.000000e+00> : vector<32x128xf32>
    %38 = tpu.matmul %37, %26, %cst_16 {dimension_numbers = #tpu.dot_dimension_numbers<[1], [0], [0], [1], [0, 0, 1, 1], [], []>} : vector<32x128xbf16>, vector<128x128xbf16>, vector<32x128xf32> -> vector<32x128xf32>
    %39 = vector.broadcast %27 : vector<1x128xf32> to vector<32x128xf32>
    %40 = arith.addf %38, %39 : vector<32x128xf32>
    %cst_17 = arith.constant 0.000000e+00 : f32
    %41 = vector.broadcast %cst_17 : f32 to vector<32x128xf32>
    %42 = arith.maximumf %40, %41 : vector<32x128xf32>
    %c0_18 = arith.constant 0 : index
    %c0_19 = arith.constant 0 : index
    %43 = vector.load %arg7[%c0_18, %c0_19] : memref<128x128xbf16, #tpu.memory_space<vmem>>, vector<128x128xbf16>
    %c0_20 = arith.constant 0 : index
    %c0_21 = arith.constant 0 : index
    %44 = vector.load %arg8[%c0_20, %c0_21] : memref<1x128xf32, #tpu.memory_space<vmem>>, vector<1x128xf32>
    %45 = vector.broadcast %6 : vector<32x1xf32> to vector<32x128xf32>
    %46 = arith.mulf %45, %42 : vector<32x128xf32>
    %47 = arith.truncf %46 : vector<32x128xf32> to vector<32x128xbf16>
    %cst_22 = arith.constant dense<0.000000e+00> : vector<32x128xf32>
    %48 = tpu.matmul %0, %47, %cst_22 {dimension_numbers = #tpu.dot_dimension_numbers<[1], [0], [0], [1], [0, 0, 1, 1], [], []>} : vector<32x32xbf16>, vector<32x128xbf16>, vector<32x128xf32> -> vector<32x128xf32>
    %49 = vector.broadcast %6 : vector<32x1xf32> to vector<32x128xf32>
    %50 = arith.mulf %49, %48 : vector<32x128xf32>
    %51 = vector.broadcast %7 : vector<32x1xf32> to vector<32x128xf32>
    %52 = arith.mulf %51, %42 : vector<32x128xf32>
    %53 = arith.addf %50, %52 : vector<32x128xf32>
    %54 = arith.truncf %53 : vector<32x128xf32> to vector<32x128xbf16>
    %cst_23 = arith.constant dense<0.000000e+00> : vector<32x128xf32>
    %55 = tpu.matmul %54, %43, %cst_23 {dimension_numbers = #tpu.dot_dimension_numbers<[1], [0], [0], [1], [0, 0, 1, 1], [], []>} : vector<32x128xbf16>, vector<128x128xbf16>, vector<32x128xf32> -> vector<32x128xf32>
    %56 = vector.broadcast %44 : vector<1x128xf32> to vector<32x128xf32>
    %57 = arith.addf %55, %56 : vector<32x128xf32>
    %cst_24 = arith.constant 0.000000e+00 : f32
    %58 = vector.broadcast %cst_24 : f32 to vector<32x128xf32>
    %59 = arith.maximumf %57, %58 : vector<32x128xf32>
    %c0_25 = arith.constant 0 : index
    %c0_26 = arith.constant 0 : index
    %60 = vector.load %arg9[%c0_25, %c0_26] : memref<128x128xbf16, #tpu.memory_space<vmem>>, vector<128x128xbf16>
    %c0_27 = arith.constant 0 : index
    %c0_28 = arith.constant 0 : index
    %61 = vector.load %arg10[%c0_27, %c0_28] : memref<1x128xf32, #tpu.memory_space<vmem>>, vector<1x128xf32>
    %62 = arith.truncf %59 : vector<32x128xf32> to vector<32x128xbf16>
    %cst_29 = arith.constant dense<0.000000e+00> : vector<32x128xf32>
    %63 = tpu.matmul %62, %60, %cst_29 {dimension_numbers = #tpu.dot_dimension_numbers<[1], [0], [0], [1], [0, 0, 1, 1], [], []>} : vector<32x128xbf16>, vector<128x128xbf16>, vector<32x128xf32> -> vector<32x128xf32>
    %64 = vector.broadcast %61 : vector<1x128xf32> to vector<32x128xf32>
    %65 = arith.addf %63, %64 : vector<32x128xf32>
    %c0_30 = arith.constant 0 : index
    %c0_31 = arith.constant 0 : index
    %66 = vector.load %arg11[%c0_30, %c0_31] : memref<32x128xf32, #tpu.memory_space<vmem>>, vector<32x128xf32>
    tpu.vector_store %arg11[%c0_30, %c0_31], %65 {strides = array<i32>} : memref<32x128xf32, #tpu.memory_space<vmem>>, vector<32x128xf32>,
    return
  }
  func.func @transform_0(%arg0: i32) -> (i32, i32) {
    %c0_i32 = arith.constant 0 : i32
    %c0_i32_0 = arith.constant 0 : i32
    %c0_i32_1 = arith.constant 0 : i32
    return %c0_i32, %c0_i32_0 : i32, i32
  }
  func.func @transform_1(%arg0: i32) -> (i32, i32) {
    %c0_i32 = arith.constant 0 : i32
    %c0_i32_0 = arith.constant 0 : i32
    %c0_i32_1 = arith.constant 0 : i32
    return %c0_i32, %c0_i32_0 : i32, i32
  }
  func.func @transform_2(%arg0: i32) -> (i32, i32) {
    %c0_i32 = arith.constant 0 : i32
    %c0_i32_0 = arith.constant 0 : i32
    %c0_i32_1 = arith.constant 0 : i32
    return %c0_i32, %c0_i32_0 : i32, i32
  }
  func.func @transform_3(%arg0: i32) -> (i32, i32) {
    %c0_i32 = arith.constant 0 : i32
    %c0_i32_0 = arith.constant 0 : i32
    %c0_i32_1 = arith.constant 0 : i32
    return %c0_i32, %c0_i32_0 : i32, i32
  }
  func.func @transform_4(%arg0: i32) -> (i32, i32) {
    %c0_i32 = arith.constant 0 : i32
    %c0_i32_0 = arith.constant 0 : i32
    %c0_i32_1 = arith.constant 0 : i32
    return %c0_i32, %c0_i32_0 : i32, i32
  }
  func.func @transform_5(%arg0: i32) -> (i32, i32) {
    %c0_i32 = arith.constant 0 : i32
    %c0_i32_0 = arith.constant 0 : i32
    %c0_i32_1 = arith.constant 0 : i32
    return %c0_i32, %c0_i32_0 : i32, i32
  }
  func.func @transform_6(%arg0: i32) -> (i32, i32) {
    %c0_i32 = arith.constant 0 : i32
    %c0_i32_0 = arith.constant 0 : i32
    %c0_i32_1 = arith.constant 0 : i32
    return %c0_i32, %c0_i32_0 : i32, i32
  }
  func.func @transform_7(%arg0: i32) -> (i32, i32) {
    %c0_i32 = arith.constant 0 : i32
    %c0_i32_0 = arith.constant 0 : i32
    %c0_i32_1 = arith.constant 0 : i32
    return %c0_i32, %c0_i32_0 : i32, i32
  }
  func.func @transform_8(%arg0: i32) -> (i32, i32) {
    %c0_i32 = arith.constant 0 : i32
    %c0_i32_0 = arith.constant 0 : i32
    %c0_i32_1 = arith.constant 0 : i32
    return %c0_i32, %c0_i32_0 : i32, i32
  }
  func.func @transform_9(%arg0: i32) -> (i32, i32) {
    %c0_i32 = arith.constant 0 : i32
    %c0_i32_0 = arith.constant 0 : i32
    %c0_i32_1 = arith.constant 0 : i32
    return %c0_i32, %c0_i32_0 : i32, i32
  }
  func.func @transform_10(%arg0: i32) -> (i32, i32) {
    %c0_i32 = arith.constant 0 : i32
    %c0_i32_0 = arith.constant 0 : i32
    %c0_i32_1 = arith.constant 0 : i32
    return %c0_i32, %c0_i32_0 : i32, i32
  }
}

</mosaic_0001>

<bundles_post_ra>
// kernel: tpu_custom_call.1
= control target key start
LH: loop header
LB: loop body
LE: loop exit
PB: predicated region body
PF: predicated region fallthrough
CT: control target
= control target key end

     0   :  { %15 = vsyncpa [#allocation3], 0  ;;  %s1296_s0 = inlined_call_operand.hbm [shape: bf16[32,32], index: 0, kind: input, shape index: {}]   ;;  %s1297_s1 = inlined_call_operand.hbm [shape: f32[32,128], index: 1, kind: input, shape index: {}]   ;;  %s1298_s2 = inlined_call_operand.hbm [shape: bf16[128,128], index: 2, kind: input, shape index: {}]   ;;  %s1299_s3 = inlined_call_operand.vmem [shape: f32[1,128], index: 3, kind: input, shape index: {}]   ;;  %s1300_s4 = inlined_call_operand.hbm [shape: bf16[128,128], index: 4, kind: input, shape index: {}]   ;;  %s1301_s5 = inlined_call_operand.vmem [shape: f32[1,128], index: 5, kind: input, shape index: {}]   ;;  %s1302_s6 = inlined_call_operand.hbm [shape: bf16[128,128], index: 6, kind: input, shape index: {}]   ;;  %s1303_s7 = inlined_call_operand.vmem [shape: f32[1,128], index: 7, kind: input, shape index: {}]   ;;  %s1304_s8 = inlined_call_operand.hbm [shape: bf16[128,128], index: 8, kind: input, shape index: {}]   ;;  %s1305_s9 = inlined_call_operand.vmem [shape: f32[1,128], index: 9, kind: input, shape index: {}]   ;;  %s1306_s10 = inlined_call_operand.hbm [shape: f32[32,128], index: 10, kind: output, shape index: {}]  }
   0x1   :  { %16 = vsyncpa [#allocation6], 0 }
   0x2   :  { %17 = vsyncpa [#allocation9], 0 }
   0x3   :  { %18 = vsyncpa [#allocation12], 0  ;;  %s37_s15 = sshll.u32 %s1297_s1, 4  ;;  %s38_s15 = int_to_ptr.hbm [resolvable:$true] %s37_s15 }
   0x4   :  { %19 = vsyncpa [#allocation4], 0  ;;  %s1110_s16 = smov [#allocation5]   ;;  %s1111_s18 = smov 128  }
   0x5   :  { %s39_s17 = sshll.u32 %s1110_s16, 4  ;;  %s1112_s19 = smov 8   ;;  %s40_s17 = int_to_ptr.vmem [resolvable:$true] %s39_s17 }
   0x6   :  { %45 = dma.hbm_to_vmem [thread:$0]  %s38_s15, 512, %s40_s17, [#allocation6], %s1111_s18, %s1111_s18, %s1112_s19  }
   0x7   :  { %s65_s22 = sshll.u32 %s1300_s4, 4  ;;  %s1113_s23 = smov [#allocation8]   ;;  %s66_s22 = int_to_ptr.hbm [resolvable:$true] %s65_s22 }
   0x8   :  { %s67_s24 = sshll.u32 %s1113_s23, 4  ;;  %s24_s26 = sshll.u32 %s1296_s0, 4  ;;  %s68_s24 = int_to_ptr.vmem [resolvable:$true] %s67_s24  ;;  %s25_s26 = int_to_ptr.hbm [resolvable:$true] %s24_s26 }
   0x9   :  { %s1114_s27 = smov 64   ;;  %s1115_s28 = smov 4  }
   0xa   :  { %73 = dma.hbm_to_vmem [thread:$0]  %s66_s22, 1024, %s68_s24, [#allocation9], %s1114_s27, %s1114_s27, %s1115_s28  }
   0xb   :  { %s50_s11 = sshll.u32 %s1298_s2, 4  ;;  %s1116_s12 = smov [#allocation2]   ;;  %s51_s11 = int_to_ptr.hbm [resolvable:$true] %s50_s11 }
   0xc   :  { %s26_s13 = sshll.u32 %s1116_s12, 4  ;;  %s1117_s4 = smov [#allocation7]   ;;  %s27_s13 = int_to_ptr.vmem [resolvable:$true] %s26_s13 }
   0xd   :  { %32 = dma.hbm_to_vmem [thread:$0]  %s25_s26, 256, %s27_s13, [#allocation3], %s1114_s27, %s1114_s27, %s1115_s28  }
   0xe   :  { %s52_s14 = sshll.u32 %s1117_s4, 4  ;;  %s80_s0 = sshll.u32 %s1302_s6, 4  ;;  %s53_s14 = int_to_ptr.vmem [resolvable:$true] %s52_s14  ;;  %s81_s0 = int_to_ptr.hbm [resolvable:$true] %s80_s0 }
   0xf   :  { %58 = dma.hbm_to_vmem [thread:$0]  %s51_s11, 1024, %s53_s14, [#allocation6], %s1114_s27, %s1114_s27, %s1115_s28  }
  0x10   :  { %s95_s21 = sshll.u32 %s1304_s8, 4  ;;  %s1118_s22 = smov [#allocation10]   ;;  %s96_s21 = int_to_ptr.hbm [resolvable:$true] %s95_s21 }
  0x11   :  { %s82_s2 = sshll.u32 %s1118_s22, 4  ;;  %s1119_s23 = smov [#allocation11]   ;;  %s83_s2 = int_to_ptr.vmem [resolvable:$true] %s82_s2 }
  0x12   :  { %88 = dma.hbm_to_vmem [thread:$0]  %s81_s0, 1024, %s83_s2, [#allocation9], %s1114_s27, %s1114_s27, %s1115_s28  }
  0x13   :  { %s97_s24 = sshll.u32 %s1119_s23, 4  ;;  %s98_s24 = int_to_ptr.vmem [resolvable:$true] %s97_s24 }
  0x14   :  { %103 = dma.hbm_to_vmem [thread:$0]  %s96_s21, 1024, %s98_s24, [#allocation12], %s1114_s27, %s1114_s27, %s1115_s28  }
  0x15   :  { %1100 = dma.done.wait [#allocation3], 256  }
  0x16   :  { %1101 = vsyncadd [#allocation3], 4294967040 }
  0x17   :  { %1102 = dma.done.wait [#allocation6], 1536  }
  0x18   :  { %1103 = vsyncadd [#allocation6], 4294965760 }
  0x19   :  { %1104 = dma.done.wait [#allocation9], 2048  }
  0x1a   :  { %1105 = vsyncadd [#allocation9], 4294965248 }
  0x1b   :  { %1106 = dma.done.wait [#allocation12], 1024  }
  0x1c   :  { %1107 = vsyncadd [#allocation12], 4294966272  ;;  %v133_v0 = vld [vmem:[#allocation2 + $0x8] sm:$0xff]   ;;  %vm139_vm0 = vcmask 261120   ;;  %v131_v1 = vld [vmem:[#allocation2] sm:$0xff]   ;;  %s709_s11 = sshll.u32 %s1306_s10, 4  ;;  %s710_s11 = int_to_ptr.hbm [resolvable:$true] %s709_s11 }
  0x1d   :  { %v137_v2 = vunpack.c.l.bf16 %v133_v0  ;;  %v135_v3 = vunpack.c.l.bf16 %v131_v1  ;;  %v138_v6 = vunpack.c.h.bf16 %v133_v0  ;;  %v136_v7 = vunpack.c.h.bf16 %v131_v1  ;;  %v876_v38 = vld [vmem:[#allocation7 + $0x38] sm:$0xff]  ;;  %v202_v43 = vld [vmem:[#allocation5 + $0x10] sm:$0xff]  ;;  %v201_v48 = vld [vmem:[#allocation5 + $0x8] sm:$0xff] }
  0x1e   :  { %v203_v44 = vld [vmem:[#allocation5 + $0x18] sm:$0xff]  ;;  %327 = vmatpush.bf16.msra.mxu1 %v876_v38  ;;  %v875_v45 = vld [vmem:[#allocation7 + $0x30] sm:$0xff]  ;;  %v200_v53 = vld [vmem:[#allocation5] sm:$0xff] }
  0x1f   :  { %v146_v4 = vsel %vm139_vm0, %v137_v2, 0.0  ;;  %v140_v5 = vsel %vm139_vm0, %v135_v3, 0.0  ;;  %v149_v8 = vsel %vm139_vm0, %v138_v6, 0.0  ;;  %v143_v9 = vsel %vm139_vm0, %v136_v7, 0.0  ;;  %v874_v54 = vld [vmem:[#allocation7 + $0x28] sm:$0xff]  ;;  %v873_v58 = vld [vmem:[#allocation7 + $0x20] sm:$0xff] }
  0x20   :  { %147 = vadd.xlane.f32.xlu0 %v146_v4  ;;  %141 = vadd.xlane.f32.xlu1 %v140_v5  ;;  %v1214_v60 = vld [vmem:[#allocation2] sm:$0xff]  ;;  %v1218_v61 = vld [vmem:[#allocation2 + $0x8] sm:$0xff]  ;;  %v870_v0 = vld [vmem:[#allocation7 + $0x8] sm:$0xff] }
  0x21   :  { %v872_v62 = vld [vmem:[#allocation7 + $0x18] sm:$0xff]  ;;  %v871_v63 = vld [vmem:[#allocation7 + $0x10] sm:$0xff]  ;;  %v869_v1 = vld [vmem:[#allocation7] sm:$0xff] }
  0x22   :  { %328 = vmatpush.bf16.msra.mxu1 %v875_v45 }
  0x26   :  { %329 = vmatpush.bf16.msra.mxu1 %v874_v54  ;;  %v877_v54 = vld [vmem:[#allocation8] sm:$0xff] }
  0x28   :  { %150 = vadd.xlane.f32.xlu0 %v149_v8  ;;  %144 = vadd.xlane.f32.xlu1 %v143_v9 }
  0x2a   :  { %330 = vmatpush.bf16.msra.mxu1 %v873_v58 }
  0x2e   :  { %331 = vmatpush.bf16.msra.mxu1 %v872_v62 }
  0x32   :  { %332 = vmatpush.bf16.msra.mxu1 %v871_v63 }
  0x36   :  { %333 = vmatpush.bf16.msra.mxu1 %v870_v0 }
  0x3a   :  { %334 = vmatpush.bf16.msra.mxu1 %v869_v1 }
  0x93   :  { %v148_v10 = vpop.xlane.xlu0 %147  ;;  %v142_v11 = vpop.xlane.xlu1 %141 }
  0x94   :  { %v154_v12 = vadd.f32 1.0, %v148_v10  ;;  %v152_v13 = vadd.f32 1.0, %v142_v11 }
  0x96   :  { %924 = vrsqrt.f32 %v154_v12  ;;  %vm182_vm2 = vweird.f32 %v154_v12  ;;  %vm162_vm10 = vweird.f32 %v152_v13 }
  0x97   :  { %926 = vrsqrt.f32 %v152_v13 }
  0x9b   :  { %v151_v14 = vpop.xlane.xlu0 %150  ;;  %v145_v15 = vpop.xlane.xlu1 %144 }
  0x9c   :  { %v925_v16 = vpop.eup %924  ;;  %v155_v17 = vadd.f32 1.0, %v151_v14  ;;  %v153_v18 = vadd.f32 1.0, %v145_v15 }
  0x9d   :  { %v927_v19 = vpop.eup %926  ;;  %v177_v20 = vmul.f32 %v925_v16, %v154_v12  ;;  %vm183_vm1 = vweird.f32 %v925_v16 }
  0x9e   :  { %v157_v21 = vmul.f32 %v927_v19, %v152_v13  ;;  %928 = vrsqrt.f32 %v155_v17  ;;  %vm184_vm4 = vmor %vm182_vm2, %vm183_vm1  ;;  %vm163_vm5 = vweird.f32 %v927_v19  ;;  %vm192_vm7 = vweird.f32 %v155_v17 }
  0x9f   :  { %v178_v22 = vmul.f32 %v925_v16, %v177_v20  ;;  %930 = vrsqrt.f32 %v153_v18  ;;  %vm172_vm9 = vweird.f32 %v153_v18  ;;  %vm164_vm12 = vmor %vm162_vm10, %vm163_vm5 }
  0xa0   :  { %v158_v24 = vmul.f32 %v927_v19, %v157_v21 }
  0xa1   :  { %v179_v23 = vmul.f32 0.5, %v178_v22 }
  0xa2   :  { %v159_v28 = vmul.f32 0.5, %v158_v24 }
  0xa3   :  { %v180_v27 = vsub.f32 1.5, %v179_v23 }
  0xa4   :  { %v929_v25 = vpop.eup %928  ;;  %v160_v34 = vsub.f32 1.5, %v159_v28 }
  0xa5   :  { %v931_v26 = vpop.eup %930  ;;  %v187_v29 = vmul.f32 %v929_v25, %v155_v17  ;;  %v181_v33 = vmul.f32 %v925_v16, %v180_v27  ;;  %vm193_vm3 = vweird.f32 %v929_v25  ;;  %v920_v27 = vld [vmem:[%s1299_s3] ss:$0 sm:$0xff] }
  0xa6   :  { %v167_v30 = vmul.f32 %v931_v26, %v153_v18  ;;  %vm173_vm6 = vweird.f32 %v931_v26  ;;  %v161_v41 = vmul.f32 %v927_v19, %v160_v34  ;;  %vm194_vm8 = vmor %vm192_vm7, %vm193_vm3 }
  0xa7   :  { %v188_v31 = vmul.f32 %v929_v25, %v187_v29  ;;  %v1201_v40 = vsel %vm184_vm4, %v925_v16, %v181_v33  ;;  %vm174_vm11 = vmor %vm172_vm9, %vm173_vm6 }
  0xa8   :  { %v168_v32 = vmul.f32 %v931_v26, %v167_v30  ;;  %v223_v50 = vmul.f32 %v202_v43, %v1201_v40  ;;  %v1210_v52 = vsel %vm164_vm12, %v927_v19, %v161_v41  ;;  %v1236_v14 = vmul.f32 %v1201_v40, %v1201_v40 }
  0xa9   :  { %v189_v35 = vmul.f32 0.5, %v188_v31  ;;  %v221_v57 = vmul.f32 %v200_v53, %v1210_v52  ;;  %v1224_v3 = vmul.f32 %v1210_v52, %v1210_v52  ;;  %v884_v31 = vld [vmem:[#allocation8 + $0x38] sm:$0xff] }
  0xaa   :  { %v169_v36 = vmul.f32 0.5, %v168_v32  ;;  %v268_v18 = vmul.f32 %v202_v43, %v1236_v14  ;;  %457 = vmatpush.bf16.msra.mxu3 %v884_v31 }
  0xab   :  { %v190_v37 = vsub.f32 1.5, %v189_v35  ;;  %v266_v7 = vmul.f32 %v200_v53, %v1224_v3  ;;  %v883_v35 = vld [vmem:[#allocation8 + $0x30] sm:$0xff]  ;;  %v878_v53 = vld [vmem:[#allocation8 + $0x8] sm:$0xff] }
  0xac   :  { %v170_v39 = vsub.f32 1.5, %v169_v36 }
  0xad   :  { %v191_v42 = vmul.f32 %v929_v25, %v190_v37 }
  0xae   :  { %v171_v46 = vmul.f32 %v931_v26, %v170_v39  ;;  %458 = vmatpush.bf16.msra.mxu3 %v883_v35 }
  0xaf   :  { %v1203_v47 = vsel %vm194_vm8, %v929_v25, %v191_v42  ;;  %v882_v42 = vld [vmem:[#allocation8 + $0x28] sm:$0xff] }
  0xb0   :  { %v1206_v49 = vsel %vm174_vm11, %v931_v26, %v171_v46  ;;  %v224_v51 = vmul.f32 %v203_v44, %v1203_v47  ;;  %v1240_v15 = vmul.f32 %v1203_v47, %v1203_v47  ;;  %v881_v46 = vld [vmem:[#allocation8 + $0x20] sm:$0xff] }
  0xb1   :  { %v222_v56 = vmul.f32 %v201_v48, %v1206_v49  ;;  %v1228_v4 = vmul.f32 %v1206_v49, %v1206_v49 }
  0xb2   :  { %v226_v55 = vpack.c.bf16 %v224_v51, %v223_v50  ;;  %v269_v19 = vmul.f32 %v203_v44, %v1240_v15  ;;  %459 = vmatpush.bf16.msra.mxu3 %v882_v42  ;;  %v880_v50 = vld [vmem:[#allocation8 + $0x18] sm:$0xff]  ;;  %v879_v51 = vld [vmem:[#allocation8 + $0x10] sm:$0xff]  ;;  %v885_v42 = vld [vmem:[#allocation10] sm:$0xff] }
  0xb3   :  { %v225_v59 = vpack.c.bf16 %v222_v56, %v221_v57  ;;  %v267_v9 = vmul.f32 %v201_v48, %v1228_v4 }
  0xb4   :  { %249 = vmatpush.bf16.msra.mxu0 %v226_v55 }
  0xb6   :  { %460 = vmatpush.bf16.msra.mxu3 %v881_v46  ;;  %v898_v46 = vld [vmem:[#allocation11 + $0x28] sm:$0xff] }
  0xb8   :  { %250 = vmatpush.bf16.msra.mxu0 %v225_v59 }
  0xba   :  { %461 = vmatpush.bf16.msra.mxu3 %v880_v50 }
  0xbb   :  { %733 = vmatmul.msk.bf16.vlgmr.msra.gmra.mxu0 %vm139_vm0, %v1214_v60 }
  0xbe   :  { %462 = vmatpush.bf16.msra.mxu3 %v879_v51 }
  0xc2   :  { %463 = vmatpush.bf16.msra.mxu3 %v878_v53  ;;  %v897_v53 = vld [vmem:[#allocation11 + $0x20] sm:$0xff] }
  0xc6   :  { %464 = vmatpush.bf16.msra.mxu3 %v877_v54 }
  0xcb   :  { %734 = vmatmul.msk.bf16.gmra.mxu0 %vm139_vm0, %v1218_v61 }
 0x138   :  { %v252_v2 = vpop.f32.mrf.mxu0 }
 0x139   :  { %v262_v5 = vmul.f32 %v252_v2, %v1210_v52 }
 0x13b   :  { %v270_v10 = vadd.f32 %v266_v7, %v262_v5 }
 0x140   :  { %v254_v6 = vpop.f32.mrf.mxu0 }
 0x141   :  { %v263_v8 = vmul.f32 %v254_v6, %v1206_v49 }
 0x143   :  { %v271_v11 = vadd.f32 %v267_v9, %v263_v8 }
 0x145   :  { %v274_v12 = vpack.c.bf16 %v271_v11, %v270_v10 }
 0x147   :  { %335 = vmatmul.bf16.vlgmr.msra.gmra.mxu1 %v274_v12 }
 0x148   :  { %v257_v13 = vpop.f32.mrf.mxu0 }
 0x149   :  { %v264_v16 = vmul.f32 %v257_v13, %v1201_v40 }
 0x14b   :  { %v272_v21 = vadd.f32 %v268_v18, %v264_v16  ;;  %v921_v18 = vld [vmem:[%s1301_s5] ss:$0 sm:$0xff] }
 0x150   :  { %v259_v17 = vpop.f32.mrf.mxu0 }
 0x151   :  { %v265_v20 = vmul.f32 %v259_v17, %v1203_v47 }
 0x153   :  { %v273_v22 = vadd.f32 %v269_v19, %v265_v20 }
 0x155   :  { %v275_v23 = vpack.c.bf16 %v273_v22, %v272_v21  ;;  %v892_v22 = vld [vmem:[#allocation10 + $0x38] sm:$0xff] }
 0x157   :  { %340 = vmatmul.bf16.gmra.mxu1 %v275_v23 }
 0x1c4   :  { %v336_v24 = vpop.f32.mrf.mxu1 }
 0x1c5   :  { %v337_v32 = vadd.f32 %v920_v27, %v336_v24 }
 0x1c7   :  { %v346_v38 = vmax.f32 %v337_v32, 0.0  ;;  %v890_v32 = vld [vmem:[#allocation10 + $0x28] sm:$0xff] }
 0x1c9   :  { %v367_v45 = vmul.f32 %v346_v38, %v1210_v52  ;;  %v396_v58 = vmul.f32 %v346_v38, %v1224_v3  ;;  %v888_v38 = vld [vmem:[#allocation10 + $0x18] sm:$0xff] }
 0x1cc   :  { %v338_v25 = vpop.f32.mrf.mxu1 }
 0x1cd   :  { %v339_v29 = vadd.f32 %v920_v27, %v338_v25 }
 0x1cf   :  { %v347_v36 = vmax.f32 %v339_v29, 0.0 }
 0x1d1   :  { %v368_v43 = vmul.f32 %v347_v36, %v1206_v49  ;;  %v397_v59 = vmul.f32 %v347_v36, %v1228_v4  ;;  %v889_v36 = vld [vmem:[#allocation10 + $0x20] sm:$0xff] }
 0x1d3   :  { %v371_v48 = vpack.c.bf16 %v368_v43, %v367_v45  ;;  %v900_v43 = vld [vmem:[#allocation11 + $0x38] sm:$0xff]  ;;  %v899_v45 = vld [vmem:[#allocation11 + $0x30] sm:$0xff] }
 0x1d4   :  { %v341_v26 = vpop.f32.mrf.mxu1  ;;  %680 = vmatpush.bf16.msrb.mxu1 %v900_v43  ;;  %901 = vmatpush.bf16.msrb.mxu3 %v900_v43 }
 0x1d5   :  { %v342_v28 = vadd.f32 %v920_v27, %v341_v26  ;;  %v891_v26 = vld [vmem:[#allocation10 + $0x30] sm:$0xff] }
 0x1d7   :  { %v348_v33 = vmax.f32 %v342_v28, 0.0 }
 0x1d8   :  { %681 = vmatpush.bf16.msrb.mxu1 %v899_v45  ;;  %902 = vmatpush.bf16.msrb.mxu3 %v899_v45 }
 0x1d9   :  { %v369_v39 = vmul.f32 %v348_v33, %v1201_v40  ;;  %v398_v7 = vmul.f32 %v348_v33, %v1236_v14 }
 0x1dc   :  { %v343_v30 = vpop.f32.mrf.mxu1  ;;  %682 = vmatpush.bf16.msrb.mxu1 %v898_v46  ;;  %903 = vmatpush.bf16.msrb.mxu3 %v898_v46 }
 0x1dd   :  { %v344_v34 = vadd.f32 %v920_v27, %v343_v30 }
 0x1df   :  { %v349_v37 = vmax.f32 %v344_v34, 0.0 }
 0x1e0   :  { %683 = vmatpush.bf16.msrb.mxu1 %v897_v53  ;;  %904 = vmatpush.bf16.msrb.mxu3 %v897_v53 }
 0x1e1   :  { %v370_v41 = vmul.f32 %v349_v37, %v1203_v47  ;;  %v399_v8 = vmul.f32 %v349_v37, %v1240_v15 }
 0x1e3   :  { %v372_v44 = vpack.c.bf16 %v370_v41, %v369_v39  ;;  %v887_v39 = vld [vmem:[#allocation10 + $0x10] sm:$0xff]  ;;  %v886_v41 = vld [vmem:[#allocation10 + $0x8] sm:$0xff] }
 0x1e5   :  { %379 = vmatpush.bf16.msra.mxu2 %v372_v44 }
 0x1e9   :  { %380 = vmatpush.bf16.msra.mxu2 %v371_v48 }
 0x1ec   :  { %767 = vmatmul.msk.bf16.vlgmr.msra.gmra.mxu2 %vm139_vm0, %v1214_v60 }
 0x1ed   :  { %587 = vmatpush.bf16.msrb.mxu2 %v892_v22 }
 0x1f1   :  { %588 = vmatpush.bf16.msrb.mxu2 %v891_v26 }
 0x1f5   :  { %589 = vmatpush.bf16.msrb.mxu2 %v890_v32 }
 0x1f9   :  { %590 = vmatpush.bf16.msrb.mxu2 %v889_v36 }
 0x1fc   :  { %768 = vmatmul.msk.bf16.gmra.mxu2 %vm139_vm0, %v1218_v61 }
 0x1fd   :  { %591 = vmatpush.bf16.msrb.mxu2 %v888_v38 }
 0x201   :  { %592 = vmatpush.bf16.msrb.mxu2 %v887_v39 }
 0x205   :  { %593 = vmatpush.bf16.msrb.mxu2 %v886_v41 }
 0x209   :  { %594 = vmatpush.bf16.msrb.mxu2 %v885_v42 }
 0x26f   :  { %v382_v55 = vpop.f32.mrf.mxu2 }
 0x270   :  { %v392_v56 = vmul.f32 %v382_v55, %v1210_v52 }
 0x272   :  { %v400_v63 = vadd.f32 %v396_v58, %v392_v56 }
 0x277   :  { %v384_v57 = vpop.f32.mrf.mxu2 }
 0x278   :  { %v393_v62 = vmul.f32 %v384_v57, %v1206_v49 }
 0x27a   :  { %v401_v0 = vadd.f32 %v397_v59, %v393_v62 }
 0x27c   :  { %v404_v1 = vpack.c.bf16 %v401_v0, %v400_v63  ;;  %v896_v0 = vld [vmem:[#allocation11 + $0x18] sm:$0xff] }
 0x27d   :  { %684 = vmatpush.bf16.msrb.mxu1 %v896_v0  ;;  %905 = vmatpush.bf16.msrb.mxu3 %v896_v0 }
 0x27e   :  { %465 = vmatmul.bf16.vlgmr.msra.gmra.mxu3 %v404_v1  ;;  %v895_v1 = vld [vmem:[#allocation11 + $0x10] sm:$0xff] }
 0x27f   :  { %v387_v2 = vpop.f32.mrf.mxu2 }
 0x280   :  { %v394_v5 = vmul.f32 %v387_v2, %v1201_v40  ;;  %v894_v2 = vld [vmem:[#allocation11 + $0x8] sm:$0xff] }
 0x281   :  { %685 = vmatpush.bf16.msrb.mxu1 %v895_v1  ;;  %906 = vmatpush.bf16.msrb.mxu3 %v895_v1 }
 0x282   :  { %v402_v10 = vadd.f32 %v398_v7, %v394_v5 }
 0x285   :  { %686 = vmatpush.bf16.msrb.mxu1 %v894_v2  ;;  %907 = vmatpush.bf16.msrb.mxu3 %v894_v2 }
 0x287   :  { %v389_v6 = vpop.f32.mrf.mxu2 }
 0x288   :  { %v395_v9 = vmul.f32 %v389_v6, %v1203_v47 }
 0x28a   :  { %v403_v11 = vadd.f32 %v399_v8, %v395_v9 }
 0x28c   :  { %v405_v12 = vpack.c.bf16 %v403_v11, %v402_v10 }
 0x28e   :  { %470 = vmatmul.bf16.gmra.mxu3 %v405_v12 }
 0x301   :  { %v466_v13 = vpop.f32.mrf.mxu3 }
 0x302   :  { %v467_v23 = vadd.f32 %v921_v18, %v466_v13 }
 0x304   :  { %v476_v29 = vmax.f32 %v467_v23, 0.0 }
 0x306   :  { %v497_v35 = vmul.f32 %v476_v29, %v1210_v52 }
 0x309   :  { %v468_v16 = vpop.f32.mrf.mxu3 }
 0x30a   :  { %v469_v20 = vadd.f32 %v921_v18, %v468_v16 }
 0x30c   :  { %v477_v27 = vmax.f32 %v469_v20, 0.0 }
 0x30e   :  { %v498_v33 = vmul.f32 %v477_v27, %v1206_v49  ;;  %v527_v50 = vmul.f32 %v477_v27, %v1228_v4 }
 0x310   :  { %v501_v37 = vpack.c.bf16 %v498_v33, %v497_v35 }
 0x311   :  { %v471_v17 = vpop.f32.mrf.mxu3 }
 0x312   :  { %v472_v19 = vadd.f32 %v921_v18, %v471_v17 }
 0x314   :  { %v478_v24 = vmax.f32 %v472_v19, 0.0  ;;  %v923_v19 = vld [vmem:[%s1305_s9] ss:$0 sm:$0xff] }
 0x316   :  { %v499_v30 = vmul.f32 %v478_v24, %v1201_v40  ;;  %v528_v59 = vmul.f32 %v478_v24, %v1236_v14 }
 0x319   :  { %v473_v21 = vpop.f32.mrf.mxu3 }
 0x31a   :  { %v474_v25 = vadd.f32 %v921_v18, %v473_v21 }
 0x31c   :  { %v479_v28 = vmax.f32 %v474_v25, 0.0 }
 0x31e   :  { %v500_v31 = vmul.f32 %v479_v28, %v1203_v47 }
 0x320   :  { %v502_v34 = vpack.c.bf16 %v500_v31, %v499_v30 }
 0x322   :  { %509 = vmatpush.bf16.msrb.mxu0 %v502_v34 }
 0x326   :  { %510 = vmatpush.bf16.msrb.mxu0 %v501_v37 }
 0x329   :  { %801 = vmatmul.msk.bf16.vlgmr.msrb.gmra.mxu0 %vm139_vm0, %v1214_v60 }
 0x339   :  { %802 = vmatmul.msk.bf16.gmra.mxu0 %vm139_vm0, %v1218_v61  ;;  %v526_v61 = vmul.f32 %v476_v29, %v1224_v3  ;;  %v529_v3 = vmul.f32 %v479_v28, %v1240_v15 }
 0x3a6   :  { %v512_v44 = vpop.f32.mrf.mxu0 }
 0x3a7   :  { %v522_v60 = vmul.f32 %v512_v44, %v1210_v52 }
 0x3a9   :  { %v530_v54 = vadd.f32 %v526_v61, %v522_v60 }
 0x3ae   :  { %v514_v48 = vpop.f32.mrf.mxu0 }
 0x3af   :  { %v523_v51 = vmul.f32 %v514_v48, %v1206_v49 }
 0x3b1   :  { %v531_v55 = vadd.f32 %v527_v50, %v523_v51 }
 0x3b3   :  { %v534_v56 = vpack.c.bf16 %v531_v55, %v530_v54 }
 0x3b5   :  { %595 = vmatmul.bf16.vlgmr.msrb.gmra.mxu2 %v534_v56 }
 0x3b6   :  { %v517_v57 = vpop.f32.mrf.mxu0 }
 0x3b7   :  { %v524_v58 = vmul.f32 %v517_v57, %v1201_v40  ;;  %v893_v40 = vld [vmem:[#allocation11] sm:$0xff] }
 0x3b8   :  { %687 = vmatpush.bf16.msrb.mxu1 %v893_v40  ;;  %908 = vmatpush.bf16.msrb.mxu3 %v893_v40 }
 0x3b9   :  { %v532_v49 = vadd.f32 %v528_v59, %v524_v58 }
 0x3be   :  { %v519_v52 = vpop.f32.mrf.mxu0 }
 0x3bf   :  { %v525_v4 = vmul.f32 %v519_v52, %v1203_v47  ;;  %v922_v47 = vld [vmem:[%s1303_s7] ss:$0 sm:$0xff]  ;;  %s1120_s7 = smov [#allocation13]  }
 0x3c0   :  { %s707_s28 = sshll.u32 %s1120_s7, 4  ;;  %s708_s28 = int_to_ptr.vmem [resolvable:$true] %s707_s28 }
 0x3c1   :  { %v533_v62 = vadd.f32 %v529_v3, %v525_v4 }
 0x3c3   :  { %v535_v63 = vpack.c.bf16 %v533_v62, %v532_v49 }
 0x3c5   :  { %600 = vmatmul.bf16.gmra.mxu2 %v535_v63 }
 0x438   :  { %v596_v14 = vpop.f32.mrf.mxu2 }
 0x439   :  { %v597_v15 = vadd.f32 %v922_v47, %v596_v14 }
 0x43b   :  { %v606_v7 = vmax.f32 %v597_v15, 0.0 }
 0x440   :  { %v598_v5 = vpop.f32.mrf.mxu2 }
 0x441   :  { %v599_v6 = vadd.f32 %v922_v47, %v598_v5 }
 0x443   :  { %v607_v8 = vmax.f32 %v599_v6, 0.0 }
 0x445   :  { %v627_v9 = vpack.c.bf16 %v607_v8, %v606_v7 }
 0x447   :  { %688 = vmatmul.bf16.vlgmr.msrb.gmra.mxu1 %v627_v9 }
 0x448   :  { %v601_v10 = vpop.f32.mrf.mxu2 }
 0x449   :  { %v602_v11 = vadd.f32 %v922_v47, %v601_v10 }
 0x44b   :  { %v608_v16 = vmax.f32 %v602_v11, 0.0 }
 0x450   :  { %v603_v12 = vpop.f32.mrf.mxu2 }
 0x451   :  { %v604_v13 = vadd.f32 %v922_v47, %v603_v12 }
 0x453   :  { %v609_v17 = vmax.f32 %v604_v13, 0.0 }
 0x455   :  { %v628_v18 = vpack.c.bf16 %v609_v17, %v608_v16 }
 0x457   :  { %693 = vmatmul.bf16.vlgmr.msrb.gmra.mxu3 %v628_v18 }
 0x4c4   :  { %v689_v20 = vpop.f32.mrf.mxu1 }
 0x4c5   :  { %v690_v21 = vadd.f32 %v923_v19, %v689_v20 }
 0x4c7   :  { %699 = vst [vmem:[#allocation13] sm:$0xff] %v690_v21 }
 0x4cc   :  { %v691_v22 = vpop.f32.mrf.mxu1 }
 0x4cd   :  { %v692_v23 = vadd.f32 %v923_v19, %v691_v22 }
 0x4cf   :  { %700 = vst [vmem:[#allocation13 + $0x8] sm:$0xff] %v692_v23 }
 0x4da   :  { %v694_v24 = vpop.f32.mrf.mxu3 }
 0x4db   :  { %v695_v25 = vadd.f32 %v923_v19, %v694_v24 }
 0x4dd   :  { %701 = vst [vmem:[#allocation13 + $0x10] sm:$0xff] %v695_v25 }
 0x4e2   :  { %v696_v26 = vpop.f32.mrf.mxu3 }
 0x4e3   :  { %v697_v27 = vadd.f32 %v923_v19, %v696_v26 }
 0x4e5   :  { %702 = vst [vmem:[#allocation13 + $0x18] sm:$0xff] %v697_v27 }
 0x4e6   :  { %715 = dma.vmem_to_hbm [thread:$0]  %s708_s28, 512, %s710_s11, [#allocation4], %s1111_s18, %s1111_s18, %s1112_s19  }
 0x4e7   :  { %1108 = dma.done.wait [#allocation4], 512  }
 0x4e8   :  { %1109 = vsyncadd [#allocation4], 4294966784 }
 0x4e9   :  { %720 = vsyncpa [#allocation3], 1 }
 0x4ea   :  { %721 = vsyncpa [#allocation6], 1 }
 0x4eb   :  { %722 = vsyncpa [#allocation9], 1 }
 0x4ec   :  { %723 = vsyncpa [#allocation12], 1 }
 0x4ed   :  { %724 = vsyncpa [#allocation4], 1 }

</bundles_post_ra>
